<compile_context>
chip_gen: v7x
topology: tpu7x:2x2x1
jax: 0.10.0
libtpu: 0.0.40
codegen_flags: <defaults>
</compile_context>

<pallas_src>
import jax
import jax.numpy as jnp
from jax.experimental import pallas as pl
from jax.experimental.pallas import tpu as pltpu


# ---------------------------------------------------------------------------
# Kernels (specialized on presence of bias)
# ---------------------------------------------------------------------------

def _linear_map_kernel_bias(x_ref, a_ref, b_ref, o_ref):
    # x: (TB, K, 1)   a: (TB, K, TM)   b: (TB, TM)   o: (TB, TM)
    # y[b, m] = sum_k A[b, k, m] * x[b, k]  + bias[b, m]
    x = x_ref[...].astype(jnp.float32)              # (TB, K, 1)
    a = a_ref[...].astype(jnp.float32)              # (TB, K, TM), M lane-dense
    y = jnp.sum(a * x, axis=1)                      # VPU mul + sublane reduce
    o_ref[...] = (y + b_ref[...].astype(jnp.float32)).astype(o_ref.dtype)


def _linear_map_kernel_nobias(x_ref, a_ref, o_ref):
    x = x_ref[...].astype(jnp.float32)
    a = a_ref[...].astype(jnp.float32)
    o_ref[...] = jnp.sum(a * x, axis=1).astype(o_ref.dtype)


# ---------------------------------------------------------------------------
# Tiling helpers
# ---------------------------------------------------------------------------

def _round_up(n, m):
    return ((n + m - 1) // m) * m


def _pick_tm(m_pad, tm):
    """Largest multiple of 128 that divides m_pad and is <= tm."""
    tm = max(128, (int(tm) // 128) * 128)
    c = (min(tm, m_pad) // 128) * 128
    while c > 128:
        if m_pad % c == 0:
            return c
        c -= 128
    return 128


def _pick_tb(batch, bytes_per_batch_row, target_bytes=2 << 20):
    """Batch tile: TB == B, or a multiple of 8 dividing B (layout rules),
    sized so the A tile per grid step is ~target_bytes."""
    tb_target = max(1, target_bytes // max(1, bytes_per_batch_row))
    if batch <= tb_target:
        return batch
    t = (min(tb_target, batch) // 8) * 8
    while t >= 8:
        if batch % t == 0:
            return t
        t -= 8
    return batch   # fallback: whole batch as one tile


# ---------------------------------------------------------------------------
# Wrapper
# ---------------------------------------------------------------------------

def linear_map_apply(x, A, bias=None, translate=None, *, tm=512):
    """Pallas kernel for  A_eta (x - v_eta) + b_eta  batched over axis 0."""
    B, K = x.shape
    out_dims = tuple(int(d) for d in A.shape[1:-1])    # the '...' dims
    assert A.shape[0] == B and A.shape[-1] == K
    M = 1
    for d in out_dims:
        M *= d

    # Hoist the translation out of the per-tile loop (single fused XLA sub);
    # if translate is None we never touch it (no zero stream).
    xm = x if translate is None else x - translate
    xm3 = xm[:, :, None]                               # (B, K, 1)

    # Lane-dense layout for the dominant HBM stream: (B, K, M), M on lanes.
    A_km = jnp.swapaxes(A.reshape(B, M, K), 1, 2)      # (B, K, M)

    m_pad = _round_up(max(M, 1), 128)
    TM = _pick_tm(m_pad, tm)
    if m_pad > M:
        A_km = jnp.pad(A_km, ((0, 0), (0, 0), (0, m_pad - M)))

    has_bias = bias is not None
    if has_bias:
        b2 = bias.reshape(B, M)
        if m_pad > M:
            b2 = jnp.pad(b2, ((0, 0), (0, m_pad - M)))

    TB = _pick_tb(B, K * TM * A_km.dtype.itemsize, target_bytes=2 << 20)
    grid = (B // TB, m_pad // TM)

    # Block specs: second-to-last dims are either full or multiples of 8,
    # last dims are full or multiples of 128.
    x_spec = pl.BlockSpec((TB, K, 1), lambda i, j: (i, 0, 0))
    a_spec = pl.BlockSpec((TB, K, TM), lambda i, j: (i, 0, j))
    o_spec = pl.BlockSpec((TB, TM), lambda i, j: (i, j))
    b_spec = pl.BlockSpec((TB, TM), lambda i, j: (i, j))

    in_specs = [x_spec, a_spec] + ([b_spec] if has_bias else [])
    args = (xm3, A_km) + ((b2,) if has_bias else ())
    kernel = _linear_map_kernel_bias if has_bias else _linear_map_kernel_nobias

    # Advisory cost estimate so XLA can overlap the surrounding linear_rep
    # matmuls with this memory-bound kernel.
    bytes_accessed = (xm3.size * xm3.dtype.itemsize
                      + A_km.size * A_km.dtype.itemsize
                      + B * m_pad * x.dtype.itemsize
                      + (b2.size * b2.dtype.itemsize if has_bias else 0))
    cost = pl.CostEstimate(flops=2 * B * M * K + (B * M if has_bias else 0),
                           transcendentals=0,
                           bytes_accessed=int(bytes_accessed))

    # Keep the double-buffered footprint generation-safe (<= 32 MiB fits the
    # scoped defaults/physical VMEM of v5e/v6e/v7x alike).
    tile_bytes = (TB * K * TM * A_km.dtype.itemsize
                  + TB * K * xm3.dtype.itemsize
                  + TB * TM * x.dtype.itemsize
                  + (TB * TM * b2.dtype.itemsize if has_bias else 0))
    vmem_limit = int(min(32 << 20, max(16 << 20, 4 * tile_bytes)))

    out = pl.pallas_call(
        kernel,
        out_shape=jax.ShapeDtypeStruct((B, m_pad), x.dtype),
        grid_spec=pltpu.PrefetchScalarGridSpec(
            num_scalar_prefetch=0,
            grid=grid,
            in_specs=in_specs,
            out_specs=o_spec,
        ),
        compiler_params=pltpu.CompilerParams(
            dimension_semantics=("parallel", "parallel"),
            vmem_limit_bytes=vmem_limit),
        cost_estimate=cost,
    )(*args)

    if m_pad > M:
        out = out[:, :M]
    return out.reshape((B,) + out_dims)


class LinearMapPallas:
    """JAX/Pallas analogue of ml_adp LinearMap(linear_rep, default_param)."""

    def __init__(self, linear_rep, default_param=None):
        self.linear_rep = linear_rep
        self.default_param = default_param

    def __call__(self, input_, param=None):
        param = param if param is not None else self.default_param
        A, b, v = self.linear_rep(param)
        if A is not None:
            return linear_map_apply(input_, A, bias=b, translate=v)
        # TODO(synk): A=None (identity linear part) path is pure elementwise;
        # handled in plain JAX glue rather than a dedicated kernel.
        y = input_
        if v is not None:
            y = y - v
        if b is not None:
            y = y + b
        return y


def make_linear_rep(key, param_dim, in_features, out_features,
                    dtype=jnp.float32):
    """Deterministic stand-in for the module's linear_rep: eta -> (A, b, v)."""
    kA, kb, kv = jax.random.split(key, 3)
    WA = 0.05 * jax.random.normal(kA, (param_dim, out_features * in_features), dtype)
    Wb = 0.05 * jax.random.normal(kb, (param_dim, out_features), dtype)
    Wv = 0.05 * jax.random.normal(kv, (param_dim, in_features), dtype)

    def linear_rep(eta):
        A = (eta @ WA).reshape(eta.shape[0], out_features, in_features)
        b = eta @ Wb
        v = eta @ Wv
        return A, b, v

    return linear_rep


if __name__ == "__main__":
    key = jax.random.PRNGKey(0)
    k_rep, k_x, k_eta, k_A2, k_x2 = jax.random.split(key, 5)

    # Case 1: full (A, b, v) path: batch=2, param-dim=8, in=32, out=256.
    B, P, K, M = 2, 8, 32, 256
    linear_rep = make_linear_rep(k_rep, P, in_features=K, out_features=M)
    lm = LinearMapPallas(linear_rep)

    x = jax.random.normal(k_x, (B, K), jnp.float32)
    eta = jax.random.normal(k_eta, (B, P), jnp.float32)

    out = jax.block_until_ready(lm(x, eta))

    A, b, v = linear_rep(eta)
    ref = jnp.einsum('bmj,bj->bm', A, x - v,
                     precision=jax.lax.Precision.HIGHEST) + b
    assert out.shape == (B, M), out.shape
    assert jnp.allclose(out, ref, rtol=1e-5, atol=1e-5), float(
        jnp.max(jnp.abs(out - ref)))

    # Case 2: A only (bias=None, translate=None), M not a multiple of 128
    # (exercises the padding path and the specialized no-bias kernel).
    M2 = 192
    A2 = 0.05 * jax.random.normal(k_A2, (B, M2, K), jnp.float32)
    x2 = jax.random.normal(k_x2, (B, K), jnp.float32)
    out2 = jax.block_until_ready(linear_map_apply(x2, A2))
    ref2 = jnp.einsum('bmj,bj->bm', A2, x2,
                      precision=jax.lax.Precision.HIGHEST)
    assert out2.shape == (B, M2), out2.shape
    assert jnp.allclose(out2, ref2, rtol=1e-5, atol=1e-5), float(
        jnp.max(jnp.abs(out2 - ref2)))

    print("KERNEL_OK")
</pallas_src>

<mosaic_0001>
module attributes {stable_mosaic.version = 11 : i64} {
  func.func @_linear_map_kernel_bias(%arg0: i32, %arg1: i32, %arg2: memref<2x32x1xf32, #tpu.memory_space<vmem>>, %arg3: memref<2x32x256xf32, #tpu.memory_space<vmem>>, %arg4: memref<2x256xf32, #tpu.memory_space<vmem>>, %arg5: memref<2x256xf32, #tpu.memory_space<vmem>>) attributes {dimension_semantics = [#tpu.dimension_semantics<parallel>, #tpu.dimension_semantics<parallel>], iteration_bounds = array<i64: 1, 1>, scalar_prefetch = 0 : i64, scratch_operands = 0 : i64, tpu.core_type = #tpu.core_type<tc>, window_params = [{transform_indices = @transform_0, window_bounds = array<i64: 2, 32, 1>}, {transform_indices = @transform_1, window_bounds = array<i64: 2, 32, 256>}, {transform_indices = @transform_2, window_bounds = array<i64: 2, 256>}, {transform_indices = @transform_3, window_bounds = array<i64: 2, 256>}]} {
    %c0 = arith.constant 0 : index
    %c0_0 = arith.constant 0 : index
    %c0_1 = arith.constant 0 : index
    %0 = vector.load %arg2[%c0, %c0_0, %c0_1] : memref<2x32x1xf32, #tpu.memory_space<vmem>>, vector<2x32x1xf32>
    %c0_2 = arith.constant 0 : index
    %c0_3 = arith.constant 0 : index
    %c0_4 = arith.constant 0 : index
    %1 = vector.load %arg3[%c0_2, %c0_3, %c0_4] : memref<2x32x256xf32, #tpu.memory_space<vmem>>, vector<2x32x256xf32>
    %2 = vector.broadcast %0 : vector<2x32x1xf32> to vector<2x32x256xf32>
    %3 = arith.mulf %1, %2 : vector<2x32x256xf32>
    %cst = arith.constant dense<0.000000e+00> : vector<2x256xf32>
    %4 = vector.multi_reduction <add>, %3, %cst [1] : vector<2x32x256xf32> to vector<2x256xf32>
    %c0_5 = arith.constant 0 : index
    %c0_6 = arith.constant 0 : index
    %5 = vector.load %arg4[%c0_5, %c0_6] : memref<2x256xf32, #tpu.memory_space<vmem>>, vector<2x256xf32>
    %6 = arith.addf %4, %5 : vector<2x256xf32>
    %c0_7 = arith.constant 0 : index
    %c0_8 = arith.constant 0 : index
    %7 = vector.load %arg5[%c0_7, %c0_8] : memref<2x256xf32, #tpu.memory_space<vmem>>, vector<2x256xf32>
    tpu.vector_store %arg5[%c0_7, %c0_8], %6 {strides = array<i32>} : memref<2x256xf32, #tpu.memory_space<vmem>>, vector<2x256xf32>,
    return
  }
  func.func @transform_0(%arg0: i32, %arg1: i32) -> (i32, i32, i32) {
    %c0_i32 = arith.constant 0 : i32
    %c0_i32_0 = arith.constant 0 : i32
    %c0_i32_1 = arith.constant 0 : i32
    return %arg0, %c0_i32, %c0_i32_0 : i32, i32, i32
  }
  func.func @transform_1(%arg0: i32, %arg1: i32) -> (i32, i32, i32) {
    %c0_i32 = arith.constant 0 : i32
    %c0_i32_0 = arith.constant 0 : i32
    return %arg0, %c0_i32, %arg1 : i32, i32, i32
  }
  func.func @transform_2(%arg0: i32, %arg1: i32) -> (i32, i32) {
    %c0_i32 = arith.constant 0 : i32
    return %arg0, %arg1 : i32, i32
  }
  func.func @transform_3(%arg0: i32, %arg1: i32) -> (i32, i32) {
    %c0_i32 = arith.constant 0 : i32
    return %arg0, %arg1 : i32, i32
  }
}

</mosaic_0001>

<bundles_post_ra>
// kernel: tpu_custom_call.1
= control target key start
LH: loop header
LB: loop body
LE: loop exit
PB: predicated region body
PF: predicated region fallthrough
CT: control target
= control target key end

     0   :  { %8 = vsyncpa [#allocation3], 0  ;;  %s349_s0 = inlined_call_operand.vmem [shape: f32[2,32,1], index: 0, kind: input, shape index: {}]   ;;  %s350_s1 = inlined_call_operand.hbm [shape: f32[2,32,256], index: 1, kind: input, shape index: {}]   ;;  %s351_s2 = inlined_call_operand.vmem [shape: f32[2,256], index: 2, kind: input, shape index: {}]   ;;  %s352_s3 = inlined_call_operand.hbm [shape: f32[2,256], index: 3, kind: output, shape index: {}]  }
   0x1   :  { %9 = vsyncpa [#allocation4], 0  ;;  %s272_s12 = smov [#allocation2]   ;;  %s224_s16 = scalar_lea.hbm %s350_s1, 2048 }
   0x2   :  { %s17_s13 = sshll.u32 %s272_s12, 4  ;;  %p225_p0 = scmp.ne.s32.totalorder %s350_s1, %s224_s16  ;;  %s18_s13 = int_to_ptr.vmem [resolvable:$true] %s17_s13 }
   0x3   :  { %p228_p1 = scmp.lt.u32.totalorder %s224_s16, %s350_s1 }
   0x5   :  { %p230_p2 = pnand %p228_p1, %p225_p0 }
   0x7   :  { %233 = shalt.err (!%p230_p2)
}
   0x8   :  { %s234_s21 = scalar_lea.vmem %s18_s13, 2048  ;;  %p239_p4 = scmp.lt.s32.totalorder %s18_s13, %s18_s13 }
   0x9   :  { %p235_p3 = scmp.ne.s32.totalorder %s18_s13, %s234_s21  ;;  %p240_p5 = scmp.lt.s32.totalorder %s234_s21, %s234_s21 }
   0xb   :  { %p241_p6 = por %p240_p5, %p239_p4 }
   0xd   :  { %p242_p7 = pnand %p241_p6, %p235_p3 }
   0xf   :  { %245 = shalt.err (!%p242_p7)
}
  0x10   :  { %s273_s22 = smov 256   ;;  %s274_s23 = smov 16  }
  0x11   :  { %23 = dma.hbm_to_vmem [thread:$0]  %s350_s1, 2048, %s18_s13, [#allocation3], %s273_s22, %s273_s22, %s274_s23  }
  0x12   :  { %268 = dma.done.wait [#allocation3], 2048  }
  0x13   :  { %269 = vsyncadd [#allocation3], 4294965248  ;;  %v275_v0 = vmov 0   ;;  %v33_v1 = vld [vmem:[%s349_s0 + $0x20] sm:$0xff]  ;;  %v34_v3 = vld [vmem:[%s349_s0 + $0x28] sm:$0xff]  ;;  %vm190_vm0 = vcmask 1041409  }
  0x14   :  { %223 = vset.pattern.permute.xlu1 %v275_v0  ;;  %222 = vset.pattern.permute.xlu0 %v275_v0  ;;  %v29_v2 = vld [vmem:[%s349_s0] sm:$0xff]  ;;  %v30_v4 = vld [vmem:[%s349_s0 + $0x8] sm:$0xff]  ;;  %v35_v5 = vld [vmem:[%s349_s0 + $0x30] sm:$0xff]  ;;  %vm192_vm1 = vcmask 1043459   ;;  %vm194_vm2 = vcmask 1045509   ;;  %vm196_vm3 = vcmask 1047559  }
  0x15   :  { %75 = vperm.xlu0 %222, %v33_v1   ;;  %55 = vperm.xlu1 %223, %v29_v2   ;;  %v31_v6 = vld [vmem:[%s349_s0 + $0x10] sm:$0xff]  ;;  %v36_v7 = vld [vmem:[%s349_s0 + $0x38] sm:$0xff]  ;;  %v48_v12 = vld [vmem:[#allocation2 + $0x58] sm:$0xff] }
  0x16   :  { %v32_v8 = vld [vmem:[%s349_s0 + $0x18] sm:$0xff]  ;;  %v40_v14 = vld [vmem:[#allocation2 + $0x18] sm:$0xff]  ;;  %v45_v15 = vld [vmem:[#allocation2 + $0x40] sm:$0xff] }
  0x17   :  { %v47_v11 = vld [vmem:[#allocation2 + $0x50] sm:$0xff]  ;;  %v46_v16 = vld [vmem:[#allocation2 + $0x48] sm:$0xff]  ;;  %v37_v19 = vld [vmem:[#allocation2] sm:$0xff] }
  0x18   :  { %v39_v13 = vld [vmem:[#allocation2 + $0x10] sm:$0xff]  ;;  %v38_v20 = vld [vmem:[#allocation2 + $0x8] sm:$0xff]  ;;  %v49_v21 = vld [vmem:[#allocation2 + $0x60] sm:$0xff] }
  0x19   :  { %80 = vperm.xlu0 %222, %v34_v3   ;;  %60 = vperm.xlu1 %223, %v30_v4   ;;  %v50_v26 = vld [vmem:[#allocation2 + $0x68] sm:$0xff]  ;;  %v41_v27 = vld [vmem:[#allocation2 + $0x20] sm:$0xff]  ;;  %v51_v39 = vld [vmem:[#allocation2 + $0x70] sm:$0xff] }
  0x1a   :  { %v42_v28 = vld [vmem:[#allocation2 + $0x28] sm:$0xff]  ;;  %v52_v44 = vld [vmem:[#allocation2 + $0x78] sm:$0xff]  ;;  %v43_v45 = vld [vmem:[#allocation2 + $0x30] sm:$0xff] }
  0x1b   :  { %v44_v46 = vld [vmem:[#allocation2 + $0x38] sm:$0xff] }
  0x1c   :  { %v215_v61 = vld.sshfl [vmem:[%s351_s2] sm:$0x33 pattern:$0x76325410]  ;;  %s277_s2 = smov [#allocation5]  }
  0x1d   :  { %85 = vperm.xlu0 %222, %v35_v5   ;;  %65 = vperm.xlu1 %223, %v31_v6   ;;  %v154_v6 = vcombine.high %v215_v61, %v215_v61  ;;  %s206_s15 = sshll.u32 %s277_s2, 4  ;;  %s207_s15 = int_to_ptr.vmem [resolvable:$true] %s206_s15 }
  0x1e   :  { %s246_s16 = scalar_lea.vmem %s207_s15, 64  ;;  %p251_p9 = scmp.lt.s32.totalorder %s207_s15, %s207_s15 }
  0x1f   :  { %p247_p8 = scmp.ne.s32.totalorder %s207_s15, %s246_s16  ;;  %p252_p10 = scmp.lt.s32.totalorder %s246_s16, %s246_s16 }
  0x21   :  { %90 = vperm.xlu0 %222, %v36_v7   ;;  %70 = vperm.xlu1 %223, %v32_v8   ;;  %v276_v7 = vmov 1983009808   ;;  %p253_p11 = por %p252_p10, %p251_p9 }
  0x22   :  { %v171_v8 = vunpack.c.l.s4 %v276_v7 }
  0x23   :  { %p254_p12 = pnand %p253_p11, %p247_p8 }
  0x94   :  { %v76_v9 = vpop.permute.xlu0 %75  ;;  %v56_v10 = vpop.permute.xlu1 %55 }
  0x95   :  { %v101_v29 = vmul.f32 %v76_v9, %v45_v15  ;;  %v102_v30 = vmul.f32 %v76_v9, %v46_v16  ;;  %v93_v31 = vmul.f32 %v56_v10, %v37_v19  ;;  %v94_v32 = vmul.f32 %v56_v10, %v38_v20 }
  0x96   :  { %v173_v9 = vlaneseq  ;;  %v156_v19 = vrot.slane %v154_v6, 1  ;;  %v172_v20 = vunpack.c.0.s8 %v171_v8 }
  0x98   :  { %v81_v17 = vpop.permute.xlu0 %80  ;;  %v61_v18 = vpop.permute.xlu1 %60 }
  0x99   :  { %v103_v22 = vmul.f32 %v81_v17, %v47_v11  ;;  %v104_v23 = vmul.f32 %v81_v17, %v48_v12  ;;  %v95_v24 = vmul.f32 %v61_v18, %v39_v13  ;;  %v96_v25 = vmul.f32 %v61_v18, %v40_v14 }
  0x9a   :  { %v155_v18 = vrot.slane %v215_v61, 1 }
  0x9b   :  { %v127_v40 = vadd.f32 %v103_v22, %v101_v29  ;;  %v136_v41 = vadd.f32 %v104_v23, %v102_v30  ;;  %v109_v42 = vadd.f32 %v95_v24, %v93_v31  ;;  %v118_v43 = vadd.f32 %v96_v25, %v94_v32 }
  0x9c   :  { %v86_v33 = vpop.permute.xlu0 %85  ;;  %v66_v34 = vpop.permute.xlu1 %65 }
  0x9d   :  { %v105_v35 = vmul.f32 %v86_v33, %v49_v21  ;;  %v106_v36 = vmul.f32 %v86_v33, %v50_v26  ;;  %v97_v37 = vmul.f32 %v66_v34, %v41_v27  ;;  %v98_v38 = vmul.f32 %v66_v34, %v42_v28 }
  0x9e   :  { %v174_v21 = vshrl.u32 %v173_v9, 7 }
  0x9f   :  { %v128_v47 = vadd.f32 %v127_v40, %v105_v35  ;;  %v137_v48 = vadd.f32 %v136_v41, %v106_v36  ;;  %v110_v49 = vadd.f32 %v109_v42, %v97_v37  ;;  %v119_v50 = vadd.f32 %v118_v43, %v98_v38 }
  0xa0   :  { %v91_v51 = vpop.permute.xlu0 %90  ;;  %v71_v52 = vpop.permute.xlu1 %70  ;;  %v175_v30 = vsub.s32 %v172_v20, %v174_v21 }
  0xa1   :  { %v107_v53 = vmul.f32 %v91_v51, %v51_v39  ;;  %v108_v54 = vmul.f32 %v91_v51, %v52_v44  ;;  %v99_v55 = vmul.f32 %v71_v52, %v43_v45  ;;  %v100_v56 = vmul.f32 %v71_v52, %v44_v46 }
  0xa3   :  { %v129_v57 = vadd.f32 %v128_v47, %v107_v53  ;;  %v138_v58 = vadd.f32 %v137_v48, %v108_v54  ;;  %v111_v59 = vadd.f32 %v110_v49, %v99_v55  ;;  %v120_v60 = vadd.f32 %v119_v50, %v100_v56 }
  0xa5   :  { %v130_v62 = vrot.slane %v129_v57, 4  ;;  %v139_v63 = vrot.slane %v138_v58, 4  ;;  %v112_v0 = vrot.slane %v111_v59, 4  ;;  %v121_v1 = vrot.slane %v120_v60, 4 }
  0xa7   :  { %v131_v2 = vadd.f32 %v130_v62, %v129_v57  ;;  %v140_v3 = vadd.f32 %v139_v63, %v138_v58  ;;  %v113_v4 = vadd.f32 %v112_v0, %v111_v59  ;;  %v122_v5 = vadd.f32 %v121_v1, %v120_v60 }
  0xa9   :  { %v132_v10 = vrot.slane %v131_v2, 2  ;;  %v141_v11 = vrot.slane %v140_v3, 2  ;;  %v114_v12 = vrot.slane %v113_v4, 2  ;;  %v123_v13 = vrot.slane %v122_v5, 2 }
  0xab   :  { %v133_v14 = vadd.f32 %v132_v10, %v131_v2  ;;  %v142_v15 = vadd.f32 %v141_v11, %v140_v3  ;;  %v115_v16 = vadd.f32 %v114_v12, %v113_v4  ;;  %v124_v17 = vadd.f32 %v123_v13, %v122_v5 }
  0xad   :  { %v134_v22 = vrot.slane %v133_v14, 1  ;;  %v143_v23 = vrot.slane %v142_v15, 1  ;;  %v116_v24 = vrot.slane %v115_v16, 1  ;;  %v125_v25 = vrot.slane %v124_v17, 1 }
  0xaf   :  { %v135_v26 = vadd.f32 %v134_v22, %v133_v14  ;;  %v144_v27 = vadd.f32 %v143_v23, %v142_v15  ;;  %v117_v28 = vadd.f32 %v116_v24, %v115_v16  ;;  %v126_v29 = vadd.f32 %v125_v25, %v124_v17 }
  0xb1   :  { %v163_v31 = vadd.f32 %v155_v18, %v135_v26  ;;  %v164_v32 = vadd.f32 %v156_v19, %v144_v27  ;;  %v161_v33 = vadd.f32 %v215_v61, %v117_v28  ;;  %v162_v34 = vadd.f32 %v154_v6, %v126_v29 }
  0xb3   :  { %v177_v35 = vcombine.low %v163_v31, %v164_v32  ;;  %v169_v36 = vcombine.low %v161_v33, %v162_v34 }
  0xb5   :  { %v184_v37 = vrot.slane %v177_v35, %v175_v30  ;;  %v176_v38 = vrot.slane %v169_v36, %v175_v30 }
  0xb7   :  { %v189_v39 = vrot.slane %v184_v37, 7 }
  0xb9   :  { %v191_v40 = vsel %vm190_vm0, %v189_v39, %v176_v38 }
  0xba   :  { %v193_v41 = vsel %vm192_vm1, %v189_v39, %v191_v40 }
  0xbb   :  { %v195_v42 = vsel %vm194_vm2, %v189_v39, %v193_v41 }
  0xbc   :  { %v197_v43 = vsel %vm196_vm3, %v189_v39, %v195_v42 }
  0xbd   :  { %199 = vst [vmem:[#allocation5] sm:$0xf] %v197_v43 }
  0xbe   :  { %257 = shalt.err (!%p254_p12)
}
  0xbf   :  { %s258_s19 = scalar_lea.hbm %s352_s3, 64 }
  0xc0   :  { %p259_p13 = scmp.ne.s32.totalorder %s352_s3, %s258_s19  ;;  %p262_p0 = scmp.lt.u32.totalorder %s258_s19, %s352_s3 }
  0xc2   :  { %p264_p1 = pnand %p262_p0, %p259_p13 }
  0xc4   :  { %267 = shalt.err (!%p264_p1)
}
  0xc5   :  { %209 = dma.vmem_to_hbm [thread:$0]  %s207_s15, 64, %s352_s3, [#allocation4]  }
  0xc6   :  { %270 = dma.done.wait [#allocation4], 64  }
  0xc7   :  { %271 = vsyncadd [#allocation4], 4294967232 }
  0xc8   :  { %213 = vsyncpa [#allocation3], 1 }
  0xc9   :  { %214 = vsyncpa [#allocation4], 1 }

</bundles_post_ra>
